<compile_context>
chip_gen: v5e
topology: v5e:2x2
jax: 0.10.0
libtpu: 0.0.40
codegen_flags: <defaults>
</compile_context>

<pallas_src>
import math

import jax
import jax.numpy as jnp
from jax.experimental import pallas as pl
from jax.experimental.pallas import tpu as pltpu


_LANE = 128                      # lane (last-dim) tiling unit
_MAX_PACK_LANES = 1024           # largest packed lane width we accept (lcm(d,128))
_SMALL_PROBLEM_ELEMS = 32 * 1024  # below this, let XLA fuse a plain clip


def _round_up(n: int, m: int) -> int:
    return ((n + m - 1) // m) * m


def _sublane_unit(dtype) -> int:
    """Minimum second-to-last tiling: f32 -> 8, bf16 -> 16, 8-bit -> 32."""
    bits = jnp.dtype(dtype).itemsize * 8
    return max(8, 256 // bits)


def _device_tile_config():
    """(target_tile_bytes, vmem_limit_bytes or None) per TPU generation."""
    kind = ""
    try:
        kind = jax.devices()[0].device_kind.lower()
    except Exception:  # pragma: no cover - no device info, be conservative
        pass
    if "v6" in kind:                       # v6e: ~1.4 TB/s, 32 MiB scoped default
        return 4 << 20, None
    if "v7" in kind or "7x" in kind:       # v7x: 3.2 TB/s, 64 MiB VMEM per TC
        # 4 live buffers (2 in + 2 out) x 8 MiB = 32 MiB -> raise scoped limit.
        return 8 << 20, 48 << 20
    return 2 << 20, None                   # v5e / unknown: 16 MiB scoped default


def _pick_tb(rows: int, row_bytes: int, sub: int, tile_bytes: int) -> int:
    """Batch-tile rows: ~tile_bytes per tile, multiple of `sub`, >=2 tiles
    when possible (v7x megacore), or the full extent for tiny inputs."""
    tb = max(sub, (tile_bytes // max(row_bytes, 1)) // sub * sub)
    if tb >= rows:
        if rows >= 2 * sub:
            tb = _round_up((rows + 1) // 2, sub)   # split across 2 TensorCores
        else:
            tb = rows                              # block == full dim (legal)
    return tb


def _act_clip_kernel(x_ref, lb_ref, ub_ref, o_ref):
    # Pure VPU elementwise clamp; lb/ub are (1, L) rows broadcast over sublanes.
    o_ref[...] = jnp.minimum(jnp.maximum(x_ref[...], lb_ref[...]), ub_ref[...])


def act_clip(x: jax.Array, lb: jax.Array, ub: jax.Array, *,
             force_pallas: bool = False, donate_x: bool = False) -> jax.Array:
    """y = min(max(x, lb), ub);  x:(B, D) or (D,), lb/ub:(D,)."""
    squeeze = False
    if x.ndim == 1:
        x = x[None, :]
        squeeze = True
    assert x.ndim == 2
    b, d = x.shape

    # Match torch type promotion for non-float inputs; otherwise keep x's
    # native floating dtype (bf16 stays bf16 -> half the HBM traffic).
    if not jnp.issubdtype(x.dtype, jnp.floating):
        x = x.astype(jnp.float32)
    dtype = x.dtype
    lb = jnp.asarray(lb).reshape(-1).astype(dtype)
    ub = jnp.asarray(ub).reshape(-1).astype(dtype)
    assert lb.shape == (d,) and ub.shape == (d,)

    def _jnp_clip(xv):
        return jnp.minimum(jnp.maximum(xv, lb[None, :]), ub[None, :])

    def _done(y):
        return y[0] if squeeze else y

    # Tiny problems: a pallas_call is an opaque custom call (blocks fusion,
    # fixed launch + DMA-setup cost) -- just let XLA fuse the clip.
    if b * d < _SMALL_PROBLEM_ELEMS and not force_pallas:
        return _done(_jnp_clip(x))

    sub = _sublane_unit(dtype)
    itemsize = jnp.dtype(dtype).itemsize
    tile_bytes, vmem_limit = _device_tile_config()
    cparams = pltpu.CompilerParams(dimension_semantics=("parallel",),
                                   vmem_limit_bytes=vmem_limit)

    # ---------------- lane-packing path (common evotorch case) -------------
    # L = lcm(d, 128): each packed row holds L/d consecutive full action rows,
    # so the reshape is a free row-major view and lb/ub tile exactly.
    L = (d * _LANE) // math.gcd(d, _LANE)
    if L <= _MAX_PACK_LANES:
        r = L // d                       # original rows per packed row
        b_pad = _round_up(b, r)
        padded = b_pad != b              # pads at most r-1 rows (rare)
        xin = jnp.pad(x, ((0, b_pad - b), (0, 0))) if padded else x
        rows = (b_pad * d) // L
        xp = xin.reshape(rows, L)        # free row-major view, no data movement
        lb2 = jnp.tile(lb, r).reshape(1, L)
        ub2 = jnp.tile(ub, r).reshape(1, L)

        tb = _pick_tb(rows, L * itemsize, sub, tile_bytes)
        # Alias only when the operand is a fresh temp (or caller donates);
        # otherwise XLA would insert a defensive full copy to honor it.
        alias = {0: 0} if (padded or donate_x) else {}

        out = pl.pallas_call(
            _act_clip_kernel,
            out_shape=jax.ShapeDtypeStruct((rows, L), dtype),
            grid_spec=pl.GridSpec(
                grid=(pl.cdiv(rows, tb),),
                in_specs=[
                    pl.BlockSpec((tb, L), lambda i: (i, 0)),   # streamed x tiles
                    pl.BlockSpec((1, L), lambda i: (0, 0)),    # lb resident
                    pl.BlockSpec((1, L), lambda i: (0, 0)),    # ub resident
                ],
                out_specs=pl.BlockSpec((tb, L), lambda i: (i, 0)),
            ),
            compiler_params=cparams,
            input_output_aliases=alias,
        )(xp, lb2, ub2)

        y = out.reshape(b_pad, d)        # free view back to (b_pad, d)
        if padded:
            y = y[:b]
        return _done(y)

    # ---------------- fallback: pad act_dim up to a multiple of 128 --------
    dp = _round_up(d, _LANE)
    # Lane padding inflates HBM traffic by dp/d plus pad/slice passes; only
    # worth it for large, near-lane-dense problems.
    if not force_pallas and (dp > 2 * d or b * dp < 8 * _SMALL_PROBLEM_ELEMS):
        return _done(_jnp_clip(x))

    # Padded lanes: lb=-inf <= ub=+inf, so clip(0)=0 there (sliced off after).
    xp = jnp.pad(x, ((0, 0), (0, dp - d)))
    lbp = jnp.pad(lb, (0, dp - d), constant_values=-jnp.inf).reshape(1, dp)
    ubp = jnp.pad(ub, (0, dp - d), constant_values=jnp.inf).reshape(1, dp)

    tb = _pick_tb(b, dp * itemsize, sub, tile_bytes)
    out = pl.pallas_call(
        _act_clip_kernel,
        out_shape=jax.ShapeDtypeStruct((b, dp), dtype),
        grid_spec=pl.GridSpec(
            grid=(pl.cdiv(b, tb),),      # last block may be partial; no batch pad
            in_specs=[
                pl.BlockSpec((tb, dp), lambda i: (i, 0)),
                pl.BlockSpec((1, dp), lambda i: (0, 0)),
                pl.BlockSpec((1, dp), lambda i: (0, 0)),
            ],
            out_specs=pl.BlockSpec((tb, dp), lambda i: (i, 0)),
        ),
        compiler_params=cparams,
        input_output_aliases={0: 0},     # xp is a fresh lane-padded temp
    )(xp, lbp, ubp)
    return _done(out[:, :d])


if __name__ == "__main__":
    key = jax.random.PRNGKey(0)
    k1, k2, k3, k4 = jax.random.split(key, 4)

    act_dim = 16
    # Deterministic per-dim Box bounds (lb < ub), as gym.spaces.Box would give.
    lb = -(jnp.arange(act_dim, dtype=jnp.float32) % 4 + 1.0) * 0.25  # [-1.0, -0.25]
    ub = (jnp.arange(act_dim, dtype=jnp.float32) % 3 + 1.0) * 0.5    # [ 0.5,  1.5]

    def ref_clip(xv, lo, hi):
        return jnp.minimum(jnp.maximum(xv, lo[None, :]), hi[None, :])

    # 1) Small shape consistent with the module (batch=2, act_dim=16), forced
    #    through the Pallas lane-packing path.
    x_small = 3.0 * jax.random.normal(k1, (2, act_dim), dtype=jnp.float32)
    y_small = jax.block_until_ready(act_clip(x_small, lb, ub, force_pallas=True))
    assert y_small.shape == x_small.shape and y_small.dtype == x_small.dtype
    assert jnp.allclose(y_small, ref_clip(x_small, lb, ub)), "small mismatch"

    # 2) Larger batch: packed path, multiple grid steps, no padding copies.
    x_big = 3.0 * jax.random.normal(k2, (16384, act_dim), dtype=jnp.float32)
    y_big = jax.block_until_ready(act_clip(x_big, lb, ub))
    assert y_big.shape == x_big.shape
    assert jnp.allclose(y_big, ref_clip(x_big, lb, ub)), "big mismatch"

    # 3) Batch not divisible by the packing factor (exercises the small pad).
    x_odd = 3.0 * jax.random.normal(k3, (37, act_dim), dtype=jnp.float32)
    y_odd = jax.block_until_ready(act_clip(x_odd, lb, ub, force_pallas=True))
    assert y_odd.shape == x_odd.shape
    assert jnp.allclose(y_odd, ref_clip(x_odd, lb, ub)), "odd-batch mismatch"

    # 4) act_dim that does not pack into <=1024 lanes -> lane-padding fallback.
    d2 = 100
    lb_f = -jnp.ones((d2,), dtype=jnp.float32)
    ub_f = jnp.ones((d2,), dtype=jnp.float32)
    x_f = 3.0 * jax.random.normal(k4, (64, d2), dtype=jnp.float32)
    y_f = jax.block_until_ready(act_clip(x_f, lb_f, ub_f, force_pallas=True))
    assert y_f.shape == x_f.shape
    assert jnp.allclose(y_f, ref_clip(x_f, lb_f, ub_f)), "fallback mismatch"

    print("KERNEL_OK")
</pallas_src>

<mosaic_0001>
module attributes {stable_mosaic.version = 11 : i64} {
  func.func @_act_clip_kernel(%arg0: i32, %arg1: memref<1x128xf32, #tpu.memory_space<vmem>>, %arg2: memref<1x128xf32, #tpu.memory_space<vmem>>, %arg3: memref<1x128xf32, #tpu.memory_space<vmem>>, %arg4: memref<1x128xf32, #tpu.memory_space<vmem>>) attributes {dimension_semantics = [#tpu.dimension_semantics<parallel>], iteration_bounds = array<i64: 1>, scalar_prefetch = 0 : i64, scratch_operands = 0 : i64, tpu.core_type = #tpu.core_type<tc>, window_params = [{transform_indices = @transform_0, window_bounds = array<i64: 1, 128>}, {pipeline_mode = #tpu.pipeline_mode<synchronous>, transform_indices = @transform_1, window_bounds = array<i64: 1, 128>}, {pipeline_mode = #tpu.pipeline_mode<synchronous>, transform_indices = @transform_2, window_bounds = array<i64: 1, 128>}, {transform_indices = @transform_3, window_bounds = array<i64: 1, 128>}]} {
    %c0 = arith.constant 0 : index
    %c0_0 = arith.constant 0 : index
    %0 = vector.load %arg1[%c0, %c0_0] : memref<1x128xf32, #tpu.memory_space<vmem>>, vector<1x128xf32>
    %c0_1 = arith.constant 0 : index
    %c0_2 = arith.constant 0 : index
    %1 = vector.load %arg2[%c0_1, %c0_2] : memref<1x128xf32, #tpu.memory_space<vmem>>, vector<1x128xf32>
    %2 = arith.maximumf %0, %1 : vector<1x128xf32>
    %c0_3 = arith.constant 0 : index
    %c0_4 = arith.constant 0 : index
    %3 = vector.load %arg3[%c0_3, %c0_4] : memref<1x128xf32, #tpu.memory_space<vmem>>, vector<1x128xf32>
    %4 = arith.minimumf %2, %3 : vector<1x128xf32>
    %c0_5 = arith.constant 0 : index
    %c0_6 = arith.constant 0 : index
    %5 = vector.load %arg4[%c0_5, %c0_6] : memref<1x128xf32, #tpu.memory_space<vmem>>, vector<1x128xf32>
    tpu.vector_store %arg4[%c0_5, %c0_6], %4 {strides = array<i32>} : memref<1x128xf32, #tpu.memory_space<vmem>>, vector<1x128xf32>,
    return
  }
  func.func @transform_0(%arg0: i32) -> (i32, i32) {
    %c0_i32 = arith.constant 0 : i32
    %c0_i32_0 = arith.constant 0 : i32
    return %arg0, %c0_i32 : i32, i32
  }
  func.func @transform_1(%arg0: i32) -> (i32, i32) {
    %c0_i32 = arith.constant 0 : i32
    %c0_i32_0 = arith.constant 0 : i32
    %c0_i32_1 = arith.constant 0 : i32
    return %c0_i32, %c0_i32_0 : i32, i32
  }
  func.func @transform_2(%arg0: i32) -> (i32, i32) {
    %c0_i32 = arith.constant 0 : i32
    %c0_i32_0 = arith.constant 0 : i32
    %c0_i32_1 = arith.constant 0 : i32
    return %c0_i32, %c0_i32_0 : i32, i32
  }
  func.func @transform_3(%arg0: i32) -> (i32, i32) {
    %c0_i32 = arith.constant 0 : i32
    %c0_i32_0 = arith.constant 0 : i32
    return %arg0, %c0_i32 : i32, i32
  }
}

</mosaic_0001>

<bundles_post_ra>
// kernel: tpu_custom_call.1
= control target key start
LH: loop header
LB: loop body
LE: loop exit
PB: predicated region body
PF: predicated region fallthrough
CT: control target
= control target key end

     0   :  { %8 = vsyncpa [#allocation3], 0  ;;  %s140_s0 = inlined_call_operand.hbm [shape: f32[1,128], index: 0, kind: input, shape index: {}, may-alias: {0,3}]   ;;  %s141_s1 = inlined_call_operand.vmem [shape: f32[1,128], index: 1, kind: input, shape index: {}]   ;;  %s142_s2 = inlined_call_operand.vmem [shape: f32[1,128], index: 2, kind: input, shape index: {}]   ;;  %s143_s3 = inlined_call_operand.hbm [shape: f32[1,128], index: 3, kind: output, shape index: {}, may-alias: {0,3}]  }
   0x1   :  { %9 = vsyncpa [#allocation4], 0  ;;  %s15_s14 = sshll.u32 %s140_s0, 4  ;;  %s106_s15 = smov [#allocation2]   ;;  %s16_s14 = int_to_ptr.hbm [resolvable:$true] %s15_s14 }
   0x2   :  { %s17_s16 = sshll.u32 %s106_s15, 4  ;;  %s18_s16 = int_to_ptr.vmem [resolvable:$true] %s17_s16 }
   0x3   :  { %20 = dma.hbm_to_vmem [thread:$0]  %s16_s14, 16, %s18_s16, [#allocation3]  }
   0x4   :  { %102 = dma.done.wait [#allocation3], 16  }
   0x5   :  { %103 = vsyncadd [#allocation3], 4294967280  ;;  %s107_s17 = smov [#allocation5]   ;;  %s42_s21 = sshll.u32 %s143_s3, 4  ;;  %v29_v0 = vld [vmem:[#allocation2] sm:$0x1]  ;;  %s43_s21 = int_to_ptr.hbm [resolvable:$true] %s42_s21 }
   0x6   :  { %s40_s18 = sshll.u32 %s107_s17, 4  ;;  %v30_v1 = vld [vmem:[%s141_s1] sm:$0x1]  ;;  %s41_s18 = int_to_ptr.vmem [resolvable:$true] %s40_s18 }
   0x7   :  { %v32_v2 = vld [vmem:[%s142_s2] sm:$0x1]  ;;  %v31_v3 = vmax.f32 %v29_v0, %v30_v1 }
   0x9   :  { %v33_v4 = vmin.f32 %v31_v3, %v32_v2 }
   0xb   :  { %34 = vst [vmem:[#allocation5] sm:$0x1] %v33_v4 }
   0xc   :  { %45 = dma.vmem_to_hbm [thread:$0]  %s41_s18, 16, %s43_s21, [#allocation4]  }
   0xd   :  { %104 = dma.done.wait [#allocation4], 16  }
   0xe   :  { %105 = vsyncadd [#allocation4], 4294967280 }
   0xf   :  { %50 = vsyncpa [#allocation3], 1 }
  0x10   :  { %51 = vsyncpa [#allocation4], 1 }

</bundles_post_ra>
